<compile_context>
chip_gen: v5e
topology: v5e:2x2
jax: 0.10.0
libtpu: 0.0.40
codegen_flags: <defaults>
</compile_context>

<pallas_src>
import jax
import jax.numpy as jnp
from jax.experimental import pallas as pl
from jax.experimental.pallas import tpu as pltpu


def _round_up(x, m):
    return (x + m - 1) // m * m


def _qfunc_kernel(x_ref, w1_ref, b1_ref, w2_ref, b2_ref, w3_ref, b3_ref, o_ref):
    """Transposed (batch-on-lanes) fused MLP forward.

    x_ref : (D,  TB) f32   -- x^T tile, batch on lanes (streamed)
    w1_ref: (H1, D)  bf16  -- torch-layout W1 (VMEM-resident)
    b1_ref: (H1, 1)  f32
    w2_ref: (H2, H1) bf16
    b2_ref: (H2, 1)  f32
    w3_ref: (1,  H2) bf16
    b3_ref: (1,  1)  f32   -- SMEM scalar
    o_ref : (1,  TB) f32   -- lane-dense output tile
    """
    # Layer 1 (concat already fused into x^T): (H1, D) @ (D, TB), f32 acc.
    h = jnp.dot(w1_ref[...], x_ref[...].astype(jnp.bfloat16),
                preferred_element_type=jnp.float32)
    # Bias-add + ReLU in f32 (v5e has no bf16 VALU).
    # TODO(synk): could run bf16 on v6e/v7x for ~2x fewer elementwise vregs.
    h = jnp.maximum(h + b1_ref[...], 0.0)

    # Layer 2: (H2, H1) @ (H1, TB).
    h = jnp.dot(w2_ref[...], h.astype(jnp.bfloat16),
                preferred_element_type=jnp.float32)
    h = jnp.maximum(h + b2_ref[...], 0.0)

    # Output layer: (1, H2) @ (H2, TB) -> lane-dense (1, TB) row of q values.
    q = jnp.dot(w3_ref[...], h.astype(jnp.bfloat16),
                preferred_element_type=jnp.float32) + b3_ref[0, 0]
    o_ref[...] = q.astype(o_ref.dtype)


def pack_params(params):
    """One-time prep: transpose weights to torch's (out, in) layout, pre-cast
    MXU operands to bf16, and reshape biases to lane-broadcastable columns."""
    w1, b1, w2, b2, w3, b3 = params                 # stored as (in, out) / (1, out)
    return (
        w1.T.astype(jnp.bfloat16),                  # (H1, D)
        b1.reshape(-1, 1).astype(jnp.float32),      # (H1, 1)
        w2.T.astype(jnp.bfloat16),                  # (H2, H1)
        b2.reshape(-1, 1).astype(jnp.float32),      # (H2, 1)
        w3.T.astype(jnp.bfloat16),                  # (1, H2)
        b3.reshape(1, 1).astype(jnp.float32),       # (1, 1) SMEM scalar
    )


def _choose_batch_tile(B, block_b):
    """Lane-dense batch tile: a multiple of 128, or the full batch if small.
    Capped so the grid has >= 2 steps whenever B > 128 so the "parallel"
    grid axis can span both v7x TensorCores."""
    if B <= 128:
        return B
    tb = min(block_b, _round_up(B, 128))
    if pl.cdiv(B, tb) < 2:
        tb = _round_up(pl.cdiv(B, 2), 128)
    return tb


def mlp_q_function(obs, act, packed_params, *, block_b=8192):
    """Fused forward pass of MLPQFunction. Returns shape (B,)."""
    w1, b1, w2, b2, w3, b3 = packed_params
    B, obs_dim = obs.shape
    act_dim = act.shape[1]
    D = obs_dim + act_dim
    H1, H2 = w1.shape[0], w2.shape[0]

    # Fused concat + transpose: ONE small XLA pass (B*D*4 bytes each way),
    # same traffic as transposing obs/act separately but yields a single
    # packed x^T stream and a single K=D layer-1 dot in the kernel.
    xT = jnp.concatenate([obs, act], axis=-1).T       # (D, B) f32, batch on lanes

    tb = _choose_batch_tile(B, block_b)
    grid = (pl.cdiv(B, tb),)

    flops = 2 * B * (D * H1 + H1 * H2 + H2)
    bytes_accessed = (B * D * 4 + B * 4
                      + (H1 * D + H2 * H1 + H2) * 2
                      + (H1 + H2 + 1) * 4)

    # Weights/biases: constant block index -> DMA'd once, stay VMEM-resident.
    const = lambda shape: pl.BlockSpec(shape, lambda i: (0,) * len(shape))

    q = pl.pallas_call(
        _qfunc_kernel,
        out_shape=jax.ShapeDtypeStruct((1, B), jnp.float32),
        grid=grid,
        in_specs=[
            pl.BlockSpec((D, tb), lambda i: (0, i)),            # x^T: streamed
            const(w1.shape),                                    # W1 (H1, D)
            const(b1.shape),                                    # b1 (H1, 1)
            const(w2.shape),                                    # W2 (H2, H1)
            const(b2.shape),                                    # b2 (H2, 1)
            const(w3.shape),                                    # w3 (1, H2)
            pl.BlockSpec(memory_space=pltpu.MemorySpace.SMEM),  # b3 scalar
        ],
        out_specs=pl.BlockSpec((1, tb), lambda i: (0, i)),      # lane-dense out
        compiler_params=pltpu.CompilerParams(
            dimension_semantics=("parallel",),                  # megacore on v7x
        ),
        cost_estimate=pl.CostEstimate(
            flops=flops, transcendentals=0, bytes_accessed=bytes_accessed),
    )(xT, w1, b1, w2, b2, w3, b3)

    # NOTE: partial final batch blocks (B % tb != 0) compute garbage in the
    # out-of-range lanes, but every output column depends only on its own
    # input column and Pallas masks the out-of-range write -- correct as long
    # as no cross-column reduction is added to the kernel.
    return jnp.reshape(q, (B,))      # (1, B) -> (B,); no transpose needed


def init_params(key, obs_dim, act_dim, hidden_sizes):
    """Deterministic init mimicking torch.nn.Linear default (U[-1/sqrt(fan_in), +])."""
    sizes = [obs_dim + act_dim] + list(hidden_sizes) + [1]
    params = []
    for j in range(len(sizes) - 1):
        fan_in, fan_out = sizes[j], sizes[j + 1]
        key, kw, kb = jax.random.split(key, 3)
        bound = 1.0 / jnp.sqrt(fan_in)
        # stored as (in, out) == torch W.T
        w = jax.random.uniform(kw, (fan_in, fan_out), jnp.float32, -bound, bound)
        b = jax.random.uniform(kb, (1, fan_out), jnp.float32, -bound, bound)
        params += [w, b]
    return params


if __name__ == "__main__":
    key = jax.random.PRNGKey(0)
    B, obs_dim, act_dim = 8, 8, 4
    hidden_sizes = (32, 32)

    k_obs, k_act, k_params = jax.random.split(key, 3)
    obs = jax.random.normal(k_obs, (B, obs_dim), jnp.float32)
    act = jax.random.normal(k_act, (B, act_dim), jnp.float32)
    raw_params = init_params(k_params, obs_dim, act_dim, hidden_sizes)
    packed = pack_params(raw_params)

    q = mlp_q_function(obs, act, packed)
    jax.block_until_ready(q)

    # Full-precision reference in plain JAX (original torch math).
    w1, b1, w2, b2, w3, b3 = raw_params
    x = jnp.concatenate([obs, act], axis=-1)
    ref = jnp.maximum(x @ w1 + b1, 0.0)
    ref = jnp.maximum(ref @ w2 + b2, 0.0)
    ref = jnp.squeeze(ref @ w3 + b3, -1)

    assert q.shape == (B,), q.shape
    # bf16 MXU inputs with f32 accumulation -> small relative error vs f32 ref.
    assert jnp.allclose(q, ref, atol=2e-2, rtol=2e-2), (q, ref)

    print("KERNEL_OK")
</pallas_src>

<mosaic_0001>
module attributes {stable_mosaic.version = 11 : i64} {
  func.func @_qfunc_kernel(%arg0: i32, %arg1: memref<12x8xf32, #tpu.memory_space<vmem>>, %arg2: memref<32x12xbf16, #tpu.memory_space<vmem>>, %arg3: memref<32x1xf32, #tpu.memory_space<vmem>>, %arg4: memref<32x32xbf16, #tpu.memory_space<vmem>>, %arg5: memref<32x1xf32, #tpu.memory_space<vmem>>, %arg6: memref<1x32xbf16, #tpu.memory_space<vmem>>, %arg7: memref<1x1xf32, #tpu.memory_space<smem>>, %arg8: memref<1x8xf32, #tpu.memory_space<vmem>>) attributes {dimension_semantics = [#tpu.dimension_semantics<parallel>], iteration_bounds = array<i64: 1>, scalar_prefetch = 0 : i64, scratch_operands = 0 : i64, tpu.core_type = #tpu.core_type<tc>, window_params = [{transform_indices = @transform_0, window_bounds = array<i64: 12, 8>}, {pipeline_mode = #tpu.pipeline_mode<synchronous>, transform_indices = @transform_1, window_bounds = array<i64: 32, 12>}, {pipeline_mode = #tpu.pipeline_mode<synchronous>, transform_indices = @transform_2, window_bounds = array<i64: 32, 1>}, {pipeline_mode = #tpu.pipeline_mode<synchronous>, transform_indices = @transform_3, window_bounds = array<i64: 32, 32>}, {pipeline_mode = #tpu.pipeline_mode<synchronous>, transform_indices = @transform_4, window_bounds = array<i64: 32, 1>}, {pipeline_mode = #tpu.pipeline_mode<synchronous>, transform_indices = @transform_5, window_bounds = array<i64: 1, 32>}, {transform_indices = @transform_6, window_bounds = array<i64: 1, 1>}, {transform_indices = @transform_7, window_bounds = array<i64: 1, 8>}]} {
    %c0 = arith.constant 0 : index
    %c0_0 = arith.constant 0 : index
    %0 = vector.load %arg2[%c0, %c0_0] : memref<32x12xbf16, #tpu.memory_space<vmem>>, vector<32x12xbf16>
    %c0_1 = arith.constant 0 : index
    %c0_2 = arith.constant 0 : index
    %1 = vector.load %arg1[%c0_1, %c0_2] : memref<12x8xf32, #tpu.memory_space<vmem>>, vector<12x8xf32>
    %2 = arith.truncf %1 : vector<12x8xf32> to vector<12x8xbf16>
    %cst = arith.constant dense<0.000000e+00> : vector<32x8xf32>
    %3 = tpu.matmul %0, %2, %cst {dimension_numbers = #tpu.dot_dimension_numbers<[1], [0], [0], [1], [0, 0, 1, 1], [], []>} : vector<32x12xbf16>, vector<12x8xbf16>, vector<32x8xf32> -> vector<32x8xf32>
    %c0_3 = arith.constant 0 : index
    %c0_4 = arith.constant 0 : index
    %4 = vector.load %arg3[%c0_3, %c0_4] : memref<32x1xf32, #tpu.memory_space<vmem>>, vector<32x1xf32>
    %5 = vector.broadcast %4 : vector<32x1xf32> to vector<32x8xf32>
    %6 = arith.addf %3, %5 : vector<32x8xf32>
    %cst_5 = arith.constant 0.000000e+00 : f32
    %7 = vector.broadcast %cst_5 : f32 to vector<32x8xf32>
    %8 = arith.maximumf %6, %7 : vector<32x8xf32>
    %c0_6 = arith.constant 0 : index
    %c0_7 = arith.constant 0 : index
    %9 = vector.load %arg4[%c0_6, %c0_7] : memref<32x32xbf16, #tpu.memory_space<vmem>>, vector<32x32xbf16>
    %10 = arith.truncf %8 : vector<32x8xf32> to vector<32x8xbf16>
    %cst_8 = arith.constant dense<0.000000e+00> : vector<32x8xf32>
    %11 = tpu.matmul %9, %10, %cst_8 {dimension_numbers = #tpu.dot_dimension_numbers<[1], [0], [0], [1], [0, 0, 1, 1], [], []>} : vector<32x32xbf16>, vector<32x8xbf16>, vector<32x8xf32> -> vector<32x8xf32>
    %c0_9 = arith.constant 0 : index
    %c0_10 = arith.constant 0 : index
    %12 = vector.load %arg5[%c0_9, %c0_10] : memref<32x1xf32, #tpu.memory_space<vmem>>, vector<32x1xf32>
    %13 = vector.broadcast %12 : vector<32x1xf32> to vector<32x8xf32>
    %14 = arith.addf %11, %13 : vector<32x8xf32>
    %cst_11 = arith.constant 0.000000e+00 : f32
    %15 = vector.broadcast %cst_11 : f32 to vector<32x8xf32>
    %16 = arith.maximumf %14, %15 : vector<32x8xf32>
    %c0_12 = arith.constant 0 : index
    %c0_13 = arith.constant 0 : index
    %17 = vector.load %arg6[%c0_12, %c0_13] : memref<1x32xbf16, #tpu.memory_space<vmem>>, vector<1x32xbf16>
    %18 = arith.truncf %16 : vector<32x8xf32> to vector<32x8xbf16>
    %cst_14 = arith.constant dense<0.000000e+00> : vector<1x8xf32>
    %19 = tpu.matmul %17, %18, %cst_14 {dimension_numbers = #tpu.dot_dimension_numbers<[1], [0], [0], [1], [0, 0, 1, 1], [], []>} : vector<1x32xbf16>, vector<32x8xbf16>, vector<1x8xf32> -> vector<1x8xf32>
    %c0_15 = arith.constant 0 : index
    %c0_16 = arith.constant 0 : index
    %20 = memref.load %arg7[%c0_15, %c0_16] : memref<1x1xf32, #tpu.memory_space<smem>>
    %21 = vector.broadcast %20 : f32 to vector<1x8xf32>
    %22 = arith.addf %19, %21 : vector<1x8xf32>
    %c0_17 = arith.constant 0 : index
    %c0_18 = arith.constant 0 : index
    %23 = vector.load %arg8[%c0_17, %c0_18] : memref<1x8xf32, #tpu.memory_space<vmem>>, vector<1x8xf32>
    tpu.vector_store %arg8[%c0_17, %c0_18], %22 {strides = array<i32>} : memref<1x8xf32, #tpu.memory_space<vmem>>, vector<1x8xf32>,
    return
  }
  func.func @transform_0(%arg0: i32) -> (i32, i32) {
    %c0_i32 = arith.constant 0 : i32
    %c0_i32_0 = arith.constant 0 : i32
    return %c0_i32, %arg0 : i32, i32
  }
  func.func @transform_1(%arg0: i32) -> (i32, i32) {
    %c0_i32 = arith.constant 0 : i32
    %c0_i32_0 = arith.constant 0 : i32
    %c0_i32_1 = arith.constant 0 : i32
    return %c0_i32, %c0_i32_0 : i32, i32
  }
  func.func @transform_2(%arg0: i32) -> (i32, i32) {
    %c0_i32 = arith.constant 0 : i32
    %c0_i32_0 = arith.constant 0 : i32
    %c0_i32_1 = arith.constant 0 : i32
    return %c0_i32, %c0_i32_0 : i32, i32
  }
  func.func @transform_3(%arg0: i32) -> (i32, i32) {
    %c0_i32 = arith.constant 0 : i32
    %c0_i32_0 = arith.constant 0 : i32
    %c0_i32_1 = arith.constant 0 : i32
    return %c0_i32, %c0_i32_0 : i32, i32
  }
  func.func @transform_4(%arg0: i32) -> (i32, i32) {
    %c0_i32 = arith.constant 0 : i32
    %c0_i32_0 = arith.constant 0 : i32
    %c0_i32_1 = arith.constant 0 : i32
    return %c0_i32, %c0_i32_0 : i32, i32
  }
  func.func @transform_5(%arg0: i32) -> (i32, i32) {
    %c0_i32 = arith.constant 0 : i32
    %c0_i32_0 = arith.constant 0 : i32
    %c0_i32_1 = arith.constant 0 : i32
    return %c0_i32, %c0_i32_0 : i32, i32
  }
  func.func @transform_6(%arg0: i32) -> (i32, i32) {
    %c0_i32 = arith.constant 0 : i32
    %c0_i32_0 = arith.constant 0 : i32
    %c0_i32_1 = arith.constant 0 : i32
    return %c0_i32, %c0_i32_0 : i32, i32
  }
  func.func @transform_7(%arg0: i32) -> (i32, i32) {
    %c0_i32 = arith.constant 0 : i32
    %c0_i32_0 = arith.constant 0 : i32
    return %c0_i32, %arg0 : i32, i32
  }
}

</mosaic_0001>

<bundles_post_ra>
// kernel: tpu_custom_call.1
= control target key start
LH: loop header
LB: loop body
LE: loop exit
PB: predicated region body
PF: predicated region fallthrough
CT: control target
= control target key end

     0   :  { %vm77_vm0 = vcmask 1045504   ;;  %v271_v5 = vmov 0   ;;  %s367_s0 = inlined_call_operand.vmem [shape: f32[12,8], index: 0, kind: input, shape index: {}]   ;;  %s368_s1 = inlined_call_operand.vmem [shape: bf16[32,12], index: 1, kind: input, shape index: {}]   ;;  %s369_s2 = inlined_call_operand.vmem [shape: f32[32,1], index: 2, kind: input, shape index: {}]   ;;  %s370_s3 = inlined_call_operand.vmem [shape: bf16[32,32], index: 3, kind: input, shape index: {}]   ;;  %s371_s4 = inlined_call_operand.vmem [shape: f32[32,1], index: 4, kind: input, shape index: {}]   ;;  %s372_s5 = inlined_call_operand.vmem [shape: bf16[1,32], index: 5, kind: input, shape index: {}]   ;;  %s373_s6 = inlined_call_operand.<no memory space> [shape: f32[1,1], index: 6, kind: input, shape index: {}]   ;;  %s374_s7 = inlined_call_operand.hbm [shape: f32[1,8], index: 7, kind: output, shape index: {}]  }
   0x1   :  { %v33_v0 = vld [vmem:[%s367_s0] sm:$0xff]  ;;  %v34_v1 = vld [vmem:[%s367_s0 + $0x8] sm:$0xf]  ;;  %v38_v3 = vld [vmem:[%s369_s2 + $0x10] sm:$0xff]  ;;  %243 = vset.pattern.permute.xlu1 %v271_v5  ;;  %242 = vset.pattern.permute.xlu0 %v271_v5 }
   0x2   :  { %v35_v2 = vpack.c.bf16 %v34_v1, %v33_v0  ;;  %v36_v4 = vld [vmem:[%s369_s2] sm:$0xff]  ;;  %52 = vperm.xlu0 %242, %v38_v3  }
   0x3   :  { %v234_v7 = vld [vmem:[%s368_s1] sm:$0xff]  ;;  %42 = vperm.xlu1 %243, %v36_v4  }
   0x4   :  { %v79_v6 = vsel %vm77_vm0, %v35_v2, 0 }
   0x5   :  { %13 = vsyncpa [#allocation4], 0  ;;  %88 = vmatpush.bf16.msra.mxu0 %v79_v6  ;;  %vm70_vm1 = vcmask 97280   ;;  %244 = vset.pattern.permute.xlu2 %v271_v5  ;;  %v39_v8 = vld [vmem:[%s369_s2 + $0x18] sm:$0xff]  ;;  %v37_v9 = vld [vmem:[%s369_s2 + $0x8] sm:$0xff]  ;;  %vm144_vm2 = vcmask 261120   ;;  %v178_v54 = vstv %s373_s6 }
   0x6   :  { %v110_v10 = vld [vmem:[%s371_s4] sm:$0xff]  ;;  %v111_v11 = vld [vmem:[%s371_s4 + $0x8] sm:$0xff]  ;;  %v112_v14 = vld [vmem:[%s371_s4 + $0x10] sm:$0xff]  ;;  %s272_s28 = smov [#allocation3]   ;;  %s204_s9 = sshll.u32 %s374_s7, 4  ;;  %vm195_vm3 = vcmask 57344   ;;  %s205_s9 = int_to_ptr.hbm [resolvable:$true] %s204_s9 }
   0x7   :  { %v235_v12 = vld [vmem:[%s368_s1 + $0x8] sm:$0xff]  ;;  %126 = vperm.xlu2 %244, %v112_v14   ;;  %v113_v17 = vld [vmem:[%s371_s4 + $0x18] sm:$0xff]  ;;  %v236_v33 = vld [vmem:[%s370_s3] sm:$0xff]  ;;  %s202_s29 = sshll.u32 %s272_s28, 4  ;;  %s203_s29 = int_to_ptr.vmem [resolvable:$true] %s202_s29 }
   0x8   :  { %221 = vmatmul.msk.bf16.vlgmr.msra.gmra.mxu0 %vm70_vm1, %v234_v7  ;;  %v237_v34 = vld [vmem:[%s370_s3 + $0x8] sm:$0xff]  ;;  %v174_v53 = vld [vmem:[%s372_s5] sm:$0x1] }
   0xa   :  { %57 = vperm.xlu0 %242, %v39_v8  }
   0xb   :  { %47 = vperm.xlu1 %243, %v37_v9  }
   0xf   :  { %131 = vperm.xlu2 %244, %v113_v17  }
  0x12   :  { %116 = vperm.xlu0 %242, %v110_v10  }
  0x13   :  { %121 = vperm.xlu1 %243, %v111_v11  }
  0x18   :  { %222 = vmatmul.msk.bf16.gmra.mxu0 %vm70_vm1, %v235_v12 }
  0x61   :  { %v127_v36 = vpop.permute.xlu2 %126 }
  0x69   :  { %v132_v41 = vpop.permute.xlu2 %131 }
  0x74   :  { %v53_v18 = vpop.permute.xlu0 %52 }
  0x75   :  { %v43_v16 = vpop.permute.xlu1 %42 }
  0x7c   :  { %v58_v22 = vpop.permute.xlu0 %57 }
  0x7d   :  { %v48_v20 = vpop.permute.xlu1 %47 }
  0x84   :  { %v117_v45 = vpop.permute.xlu0 %116 }
  0x85   :  { %v90_v13 = vpop.f32.mrf.mxu0  ;;  %v122_v39 = vpop.permute.xlu1 %121 }
  0x86   :  { %v91_v26 = vadd.f32 %v90_v13, %v43_v16 }
  0x88   :  { %v100_v31 = vmax.f32 %v91_v26, 0.0 }
  0x8d   :  { %v92_v15 = vpop.f32.mrf.mxu0 }
  0x8e   :  { %v93_v24 = vadd.f32 %v92_v15, %v48_v20 }
  0x90   :  { %v101_v29 = vmax.f32 %v93_v24, 0.0 }
  0x92   :  { %v108_v32 = vpack.c.bf16 %v101_v29, %v100_v31 }
  0x95   :  { %v95_v19 = vpop.f32.mrf.mxu0 }
  0x96   :  { %v96_v21 = vadd.f32 %v95_v19, %v53_v18 }
  0x98   :  { %v102_v27 = vmax.f32 %v96_v21, 0.0 }
  0x9d   :  { %v97_v23 = vpop.f32.mrf.mxu0 }
  0x9e   :  { %v98_v25 = vadd.f32 %v97_v23, %v58_v22 }
  0xa0   :  { %v103_v28 = vmax.f32 %v98_v25, 0.0 }
  0xa2   :  { %v109_v30 = vpack.c.bf16 %v103_v28, %v102_v27 }
  0xa4   :  { %157 = vmatpush.bf16.msra.mxu1 %v109_v30  ;;  %238 = vmatpush.bf16.msra.mxu3 %v109_v30 }
  0xa8   :  { %158 = vmatpush.bf16.msra.mxu1 %v108_v32  ;;  %239 = vmatpush.bf16.msra.mxu3 %v108_v32 }
  0xab   :  { %231 = vmatmul.msk.bf16.vlgmr.msra.gmra.mxu1 %vm144_vm2, %v236_v33  ;;  %232 = vmatmul.msk.bf16.vlgmr.msra.gmra.mxu3 %vm144_vm2, %v237_v34 }
 0x128   :  { %v160_v35 = vpop.f32.mrf.mxu1 }
 0x129   :  { %v161_v46 = vadd.f32 %v160_v35, %v117_v45 }
 0x12b   :  { %v170_v51 = vmax.f32 %v161_v46, 0.0 }
 0x12e   :  { %v165_v37 = vpop.f32.mrf.mxu3 }
 0x12f   :  { %v166_v40 = vadd.f32 %v165_v37, %v127_v36 }
 0x130   :  { %v162_v38 = vpop.f32.mrf.mxu1 }
 0x131   :  { %v163_v43 = vadd.f32 %v162_v38, %v122_v39  ;;  %v172_v47 = vmax.f32 %v166_v40, 0.0 }
 0x133   :  { %v171_v49 = vmax.f32 %v163_v43, 0.0 }
 0x135   :  { %v175_v52 = vpack.c.bf16 %v171_v49, %v170_v51 }
 0x136   :  { %v167_v42 = vpop.f32.mrf.mxu3 }
 0x137   :  { %v168_v44 = vadd.f32 %v167_v42, %v132_v41 }
 0x139   :  { %v173_v48 = vmax.f32 %v168_v44, 0.0 }
 0x13b   :  { %v176_v50 = vpack.c.bf16 %v173_v48, %v172_v47 }
 0x13d   :  { %188 = vmatpush.bf16.msra.mxu2 %v176_v50 }
 0x141   :  { %189 = vmatpush.bf16.msra.mxu2 %v175_v52 }
 0x144   :  { %233 = vmatmul.msk.bf16.vlgmr.msra.gmra.mxu2 %vm144_vm2, %v174_v53 }
 0x1c7   :  { %v191_v55 = vpop.f32.mrf.mxu2 }
 0x1c8   :  { %v192_v56 = vadd.f32 %v191_v55, %v178_v54 }
 0x1ca   :  { %196 = vst.msk [vmem:[#allocation3] sm:$0x1] %vm195_vm3, %v192_v56 }
 0x1cb   :  { %207 = dma.vmem_to_hbm [thread:$0]  %s203_s29, 16, %s205_s9, [#allocation4]  }
 0x1cf   :  { %v193_v57 = vpop.f32.mrf.mxu2 }
 0x1d0   :  { %269 = dma.done.wait [#allocation4], 16  }
 0x1d1   :  { %270 = vsyncadd [#allocation4], 4294967280 }
 0x1d2   :  { %212 = vsyncpa [#allocation4], 1 }

</bundles_post_ra>
